<compile_context>
chip_gen: v7x
topology: tpu7x:2x2x1
jax: 0.10.0
libtpu: 0.0.40
codegen_flags: <defaults>
</compile_context>

<pallas_src>
import functools
import math

import jax
import jax.numpy as jnp
from jax.experimental import pallas as pl
from jax.experimental.pallas import tpu as pltpu

LOG_STD_MIN = -20.0
LOG_STD_MAX = 2.0
_LOG_2PI = math.log(2.0 * math.pi)
_LANE = 128


def _round_up(x: int, m: int) -> int:
    return ((x + m - 1) // m) * m


def _default_block_m() -> int:
    """128 on v5e (4x128 MXU, single vst slot), 256 elsewhere."""
    try:
        kind = jax.devices()[0].device_kind.lower()
    except Exception:  # pragma: no cover
        kind = ""
    if "v5 lite" in kind or "v5e" in kind or "v5lite" in kind:
        return 128
    return 256


def _actor_kernel(se_ref, w1_ref, b1_ref, w2_ref, b2_ref, wh_ref, bh_ref,
                  out_ref, *, out_dim: int, slot: int):
    """One M-tile of the SAC actor forward.

    se_ref  : (tm, se_lanes)        f32   merged [eps | state | 0-pad]
    w1_ref  : (se_lanes, hidden)    bf16  row-padded (eps/pad rows are zero)
    b1_ref  : (1, hidden)           f32
    w2_ref  : (hidden, hidden)      bf16  (VMEM-resident across the grid)
    b2_ref  : (1, hidden)           f32
    wh_ref  : (hidden, 2*slot)      bf16  fused head: [wmu | 0-pad | wls | 0-pad]
    bh_ref  : (1, 2*slot)           f32
    out_ref : (tm, 2*slot+128)      f32   packed [action | tanh(mu) | log_prob]
              pad lanes are left uninitialized and must never be consumed.
    """
    se = se_ref[...]
    eps = se[:, 0:out_dim]                       # lane-offset 0: trivial slice

    # hidden1 + ReLU.  The merged tile feeds the matmul directly: eps / pad
    # rows of w1 are exactly zero, so they contribute nothing.
    h1 = jnp.dot(se.astype(jnp.bfloat16), w1_ref[...],
                 preferred_element_type=jnp.float32) + b1_ref[...]
    h1 = jnp.maximum(h1, 0.0)

    # hidden2 + ReLU
    h2 = jnp.dot(h1.astype(jnp.bfloat16), w2_ref[...],
                 preferred_element_type=jnp.float32) + b2_ref[...]
    h2 = jnp.maximum(h2, 0.0)

    # fused mu / log_std head: single MXU pass, halves in 128-aligned slots
    head = jnp.dot(h2.astype(jnp.bfloat16), wh_ref[...],
                   preferred_element_type=jnp.float32) + bh_ref[...]
    mu = head[:, 0:out_dim]
    log_std = head[:, slot:slot + out_dim]

    # squash + rescale log_std
    log_std = jnp.tanh(log_std)
    log_std = LOG_STD_MIN + 0.5 * (LOG_STD_MAX - LOG_STD_MIN) * (log_std + 1.0)
    std = jnp.exp(log_std)

    # reparameterized sample z = mu + std * eps, squashed action
    z = mu + std * eps
    action = jnp.tanh(z)

    # Normal(mu, std).log_prob(z): (z - mu)/std == eps exactly (identity)
    normal_lp = -0.5 * eps * eps - log_std - jnp.float32(0.5 * _LOG_2PI)
    lp = normal_lp - jnp.log(1.0 - jnp.square(action) + 1e-7)
    log_prob = jnp.sum(lp, axis=-1, keepdims=True)

    # Write only the valid lanes (no full-tile zero-fill: pad lanes of the
    # packed buffer are never read by the wrapper).
    out_ref[:, 0:out_dim] = action
    out_ref[:, slot:slot + out_dim] = jnp.tanh(mu)
    out_ref[:, 2 * slot:2 * slot + 1] = log_prob


def actor_forward(state, params, eps, *, block_m=None):
    """Returns (action, log_prob, tanh(mu)) like the PyTorch Actor.forward."""
    if block_m is None:
        block_m = _default_block_m()

    B, in_dim = state.shape
    out_dim = eps.shape[1]
    se_lanes = params["w1p"].shape[0]          # 128-aligned merged-input width
    hidden = params["w1p"].shape[1]
    slot = params["wh"].shape[1] // 2          # 128-aligned head slot width
    out_lanes = 2 * slot + _LANE               # [action | tanh(mu) | log_prob]

    # M-tiling: multiples of 8 rows (sublane).  Guarantee >= 2 grid steps
    # whenever B > 8 so the "parallel" axis actually shards across both v7x
    # TensorCores (sequential no-op on single-TC v5e/v6e).
    tm = min(block_m, _round_up(-(-B // 2), 8))
    tm = max(tm, 8)
    Bp = _round_up(B, tm)

    # Merge eps + state into one lane-dense padded stream: [eps | state | 0].
    se = jnp.concatenate([eps, state], axis=-1)
    se = jnp.pad(se, ((0, Bp - B), (0, se_lanes - (in_dim + out_dim))))

    kernel = functools.partial(_actor_kernel, out_dim=out_dim, slot=slot)

    weight_bytes = (se_lanes * hidden + hidden * hidden + hidden * 2 * slot) * 2
    cost = pl.CostEstimate(
        flops=2 * Bp * (se_lanes * hidden + hidden * hidden + hidden * 2 * slot),
        transcendentals=5 * Bp * out_dim,
        bytes_accessed=(Bp * se_lanes * 4 + weight_bytes
                        + (2 * hidden + 2 * slot) * 4 + Bp * out_lanes * 4),
    )

    packed = pl.pallas_call(
        kernel,
        out_shape=jax.ShapeDtypeStruct((Bp, out_lanes), jnp.float32),
        grid=(Bp // tm,),
        in_specs=[
            pl.BlockSpec((tm, se_lanes), lambda i: (i, 0)),       # [eps|state]
            pl.BlockSpec((se_lanes, hidden), lambda i: (0, 0)),   # w1 (resident)
            pl.BlockSpec((1, hidden), lambda i: (0, 0)),          # b1 (resident)
            pl.BlockSpec((hidden, hidden), lambda i: (0, 0)),     # w2 (resident)
            pl.BlockSpec((1, hidden), lambda i: (0, 0)),          # b2 (resident)
            pl.BlockSpec((hidden, 2 * slot), lambda i: (0, 0)),   # fused head W
            pl.BlockSpec((1, 2 * slot), lambda i: (0, 0)),        # fused head b
        ],
        out_specs=pl.BlockSpec((tm, out_lanes), lambda i: (i, 0)),
        compiler_params=pltpu.CompilerParams(
            dimension_semantics=("parallel",),     # v7x: both TCs split batch
            vmem_limit_bytes=32 * 1024 * 1024),
        cost_estimate=cost,
    )(se, params["w1p"], params["b1"], params["w2"], params["b2"],
      params["wh"], params["bh"])

    packed = packed[:B]
    action = packed[:, :out_dim]
    tanh_mu = packed[:, slot:slot + out_dim]
    log_prob = packed[:, 2 * slot:2 * slot + 1]
    return action, log_prob, tanh_mu


def init_params(key, in_dim, out_dim, hidden=512, init_w=0.003):
    """Deterministic init mirroring torch nn.Linear defaults + init_layer_uniform.

    Heads are fused/padded, w1 is row-padded to the merged-input layout
    [eps | state | pad], and weights are cast to bf16 once here.
    """
    ks = jax.random.split(key, 8)

    def torch_linear(kw, kb, fan_in, fan_out):
        bound = 1.0 / math.sqrt(fan_in)
        w = jax.random.uniform(kw, (fan_in, fan_out), jnp.float32, -bound, bound)
        b = jax.random.uniform(kb, (1, fan_out), jnp.float32, -bound, bound)
        return w, b

    w1, b1 = torch_linear(ks[0], ks[1], in_dim, hidden)
    w2, b2 = torch_linear(ks[2], ks[3], hidden, hidden)
    wmu = jax.random.uniform(ks[4], (hidden, out_dim), jnp.float32, -init_w, init_w)
    bmu = jax.random.uniform(ks[5], (1, out_dim), jnp.float32, -init_w, init_w)
    wls = jax.random.uniform(ks[6], (hidden, out_dim), jnp.float32, -init_w, init_w)
    bls = jax.random.uniform(ks[7], (1, out_dim), jnp.float32, -init_w, init_w)

    # w1 row-padded to the merged [eps | state | pad] input layout: the eps
    # and pad rows are exactly zero so the merged tile can feed the matmul.
    se_lanes = _round_up(in_dim + out_dim, _LANE)
    w1p = jnp.zeros((se_lanes, hidden), jnp.float32)
    w1p = w1p.at[out_dim:out_dim + in_dim, :].set(w1)

    # Fuse mu / log_std heads into one matmul; each half in its own
    # 128-lane-aligned slot so the kernel slices tiles, never rotates lanes.
    slot = _round_up(out_dim, _LANE)
    wh = jnp.zeros((hidden, 2 * slot), jnp.float32)
    wh = wh.at[:, :out_dim].set(wmu).at[:, slot:slot + out_dim].set(wls)
    bh = jnp.zeros((1, 2 * slot), jnp.float32)
    bh = bh.at[:, :out_dim].set(bmu).at[:, slot:slot + out_dim].set(bls)

    # Weights in bf16 (halves weight DMA; MXU accumulates in f32). Biases f32.
    return dict(
        w1p=w1p.astype(jnp.bfloat16), b1=b1,
        w2=w2.astype(jnp.bfloat16), b2=b2,
        wh=wh.astype(jnp.bfloat16), bh=bh,
    )


def actor_reference(state, params, eps):
    """Pure-JAX reference with identical numerics (bf16 matmuls, f32 math)."""
    bf = jnp.bfloat16
    in_dim = state.shape[1]
    out_dim = eps.shape[1]
    slot = params["wh"].shape[1] // 2
    w1 = params["w1p"][out_dim:out_dim + in_dim, :]
    h1 = jnp.maximum(jnp.dot(state.astype(bf), w1,
                             preferred_element_type=jnp.float32) + params["b1"], 0.0)
    h2 = jnp.maximum(jnp.dot(h1.astype(bf), params["w2"],
                             preferred_element_type=jnp.float32) + params["b2"], 0.0)
    head = jnp.dot(h2.astype(bf), params["wh"],
                   preferred_element_type=jnp.float32) + params["bh"]
    mu = head[:, :out_dim]
    log_std = jnp.tanh(head[:, slot:slot + out_dim])
    log_std = LOG_STD_MIN + 0.5 * (LOG_STD_MAX - LOG_STD_MIN) * (log_std + 1.0)
    std = jnp.exp(log_std)
    z = mu + std * eps
    action = jnp.tanh(z)
    lp = (-0.5 * eps * eps - log_std - 0.5 * _LOG_2PI
          - jnp.log(1.0 - jnp.square(action) + 1e-7))
    return action, jnp.sum(lp, axis=-1, keepdims=True), jnp.tanh(mu)


if __name__ == "__main__":
    B, IN_DIM, OUT_DIM = 8, 32, 8

    root = jax.random.PRNGKey(0)
    k_params, k_state, k_eps = jax.random.split(root, 3)

    params = init_params(k_params, IN_DIM, OUT_DIM)
    state = jax.random.normal(k_state, (B, IN_DIM), dtype=jnp.float32)
    # rsample() noise drawn outside the kernel (deterministic here).
    eps = jax.random.normal(k_eps, (B, OUT_DIM), dtype=jnp.float32)

    action, log_prob, tanh_mu = jax.jit(actor_forward)(state, params, eps)
    jax.block_until_ready((action, log_prob, tanh_mu))

    assert action.shape == (B, OUT_DIM)
    assert log_prob.shape == (B, 1)
    assert tanh_mu.shape == (B, OUT_DIM)

    a_ref, lp_ref, tm_ref = actor_reference(state, params, eps)
    assert bool(jnp.allclose(action, a_ref, rtol=1e-2, atol=1e-2))
    assert bool(jnp.allclose(tanh_mu, tm_ref, rtol=1e-2, atol=1e-2))
    assert bool(jnp.allclose(log_prob, lp_ref, rtol=1e-2, atol=5e-2))

    print("KERNEL_OK")
</pallas_src>

<mosaic_0001>
module attributes {stable_mosaic.version = 11 : i64} {
  func.func @_actor_kernel(%arg0: i32, %arg1: memref<8x128xf32, #tpu.memory_space<vmem>>, %arg2: memref<128x512xbf16, #tpu.memory_space<vmem>>, %arg3: memref<1x512xf32, #tpu.memory_space<vmem>>, %arg4: memref<512x512xbf16, #tpu.memory_space<vmem>>, %arg5: memref<1x512xf32, #tpu.memory_space<vmem>>, %arg6: memref<512x256xbf16, #tpu.memory_space<vmem>>, %arg7: memref<1x256xf32, #tpu.memory_space<vmem>>, %arg8: memref<8x384xf32, #tpu.memory_space<vmem>>) attributes {dimension_semantics = [#tpu.dimension_semantics<parallel>], iteration_bounds = array<i64: 1>, scalar_prefetch = 0 : i64, scratch_operands = 0 : i64, tpu.core_type = #tpu.core_type<tc>, window_params = [{transform_indices = @transform_0, window_bounds = array<i64: 8, 128>}, {pipeline_mode = #tpu.pipeline_mode<synchronous>, transform_indices = @transform_1, window_bounds = array<i64: 128, 512>}, {pipeline_mode = #tpu.pipeline_mode<synchronous>, transform_indices = @transform_2, window_bounds = array<i64: 1, 512>}, {pipeline_mode = #tpu.pipeline_mode<synchronous>, transform_indices = @transform_3, window_bounds = array<i64: 512, 512>}, {pipeline_mode = #tpu.pipeline_mode<synchronous>, transform_indices = @transform_4, window_bounds = array<i64: 1, 512>}, {pipeline_mode = #tpu.pipeline_mode<synchronous>, transform_indices = @transform_5, window_bounds = array<i64: 512, 256>}, {pipeline_mode = #tpu.pipeline_mode<synchronous>, transform_indices = @transform_6, window_bounds = array<i64: 1, 256>}, {transform_indices = @transform_7, window_bounds = array<i64: 8, 384>}]} {
    %c0 = arith.constant 0 : index
    %c0_0 = arith.constant 0 : index
    %0 = vector.load %arg1[%c0, %c0_0] : memref<8x128xf32, #tpu.memory_space<vmem>>, vector<8x128xf32>
    %1 = vector.extract_strided_slice %0 {offsets = [0, 0], sizes = [8, 8], strides = [1, 1]} : vector<8x128xf32> to vector<8x8xf32>
    %2 = arith.truncf %0 : vector<8x128xf32> to vector<8x128xbf16>
    %c0_1 = arith.constant 0 : index
    %c0_2 = arith.constant 0 : index
    %3 = vector.load %arg2[%c0_1, %c0_2] : memref<128x512xbf16, #tpu.memory_space<vmem>>, vector<128x512xbf16>
    %cst = arith.constant dense<0.000000e+00> : vector<8x512xf32>
    %4 = tpu.matmul %2, %3, %cst {dimension_numbers = #tpu.dot_dimension_numbers<[1], [0], [0], [1], [0, 0, 1, 1], [], []>} : vector<8x128xbf16>, vector<128x512xbf16>, vector<8x512xf32> -> vector<8x512xf32>
    %c0_3 = arith.constant 0 : index
    %c0_4 = arith.constant 0 : index
    %5 = vector.load %arg3[%c0_3, %c0_4] : memref<1x512xf32, #tpu.memory_space<vmem>>, vector<1x512xf32>
    %6 = vector.broadcast %5 : vector<1x512xf32> to vector<8x512xf32>
    %7 = arith.addf %4, %6 : vector<8x512xf32>
    %cst_5 = arith.constant 0.000000e+00 : f32
    %8 = vector.broadcast %cst_5 : f32 to vector<8x512xf32>
    %9 = arith.maximumf %7, %8 : vector<8x512xf32>
    %10 = arith.truncf %9 : vector<8x512xf32> to vector<8x512xbf16>
    %c0_6 = arith.constant 0 : index
    %c0_7 = arith.constant 0 : index
    %11 = vector.load %arg4[%c0_6, %c0_7] : memref<512x512xbf16, #tpu.memory_space<vmem>>, vector<512x512xbf16>
    %cst_8 = arith.constant dense<0.000000e+00> : vector<8x512xf32>
    %12 = tpu.matmul %10, %11, %cst_8 {dimension_numbers = #tpu.dot_dimension_numbers<[1], [0], [0], [1], [0, 0, 1, 1], [], []>} : vector<8x512xbf16>, vector<512x512xbf16>, vector<8x512xf32> -> vector<8x512xf32>
    %c0_9 = arith.constant 0 : index
    %c0_10 = arith.constant 0 : index
    %13 = vector.load %arg5[%c0_9, %c0_10] : memref<1x512xf32, #tpu.memory_space<vmem>>, vector<1x512xf32>
    %14 = vector.broadcast %13 : vector<1x512xf32> to vector<8x512xf32>
    %15 = arith.addf %12, %14 : vector<8x512xf32>
    %cst_11 = arith.constant 0.000000e+00 : f32
    %16 = vector.broadcast %cst_11 : f32 to vector<8x512xf32>
    %17 = arith.maximumf %15, %16 : vector<8x512xf32>
    %18 = arith.truncf %17 : vector<8x512xf32> to vector<8x512xbf16>
    %c0_12 = arith.constant 0 : index
    %c0_13 = arith.constant 0 : index
    %19 = vector.load %arg6[%c0_12, %c0_13] : memref<512x256xbf16, #tpu.memory_space<vmem>>, vector<512x256xbf16>
    %cst_14 = arith.constant dense<0.000000e+00> : vector<8x256xf32>
    %20 = tpu.matmul %18, %19, %cst_14 {dimension_numbers = #tpu.dot_dimension_numbers<[1], [0], [0], [1], [0, 0, 1, 1], [], []>} : vector<8x512xbf16>, vector<512x256xbf16>, vector<8x256xf32> -> vector<8x256xf32>
    %c0_15 = arith.constant 0 : index
    %c0_16 = arith.constant 0 : index
    %21 = vector.load %arg7[%c0_15, %c0_16] : memref<1x256xf32, #tpu.memory_space<vmem>>, vector<1x256xf32>
    %22 = vector.broadcast %21 : vector<1x256xf32> to vector<8x256xf32>
    %23 = arith.addf %20, %22 : vector<8x256xf32>
    %24 = vector.extract_strided_slice %23 {offsets = [0, 0], sizes = [8, 8], strides = [1, 1]} : vector<8x256xf32> to vector<8x8xf32>
    %25 = vector.extract_strided_slice %23 {offsets = [0, 128], sizes = [8, 8], strides = [1, 1]} : vector<8x256xf32> to vector<8x8xf32>
    %26 = math.tanh %25 : vector<8x8xf32>
    %cst_17 = arith.constant 1.000000e+00 : f32
    %27 = vector.broadcast %cst_17 : f32 to vector<8x8xf32>
    %28 = arith.addf %26, %27 : vector<8x8xf32>
    %cst_18 = arith.constant 1.100000e+01 : f32
    %29 = vector.broadcast %cst_18 : f32 to vector<8x8xf32>
    %30 = arith.mulf %29, %28 : vector<8x8xf32>
    %cst_19 = arith.constant -2.000000e+01 : f32
    %31 = vector.broadcast %cst_19 : f32 to vector<8x8xf32>
    %32 = arith.addf %31, %30 : vector<8x8xf32>
    %33 = math.exp %32 : vector<8x8xf32>
    %34 = arith.mulf %33, %1 : vector<8x8xf32>
    %35 = arith.addf %24, %34 : vector<8x8xf32>
    %36 = math.tanh %35 : vector<8x8xf32>
    %cst_20 = arith.constant -5.000000e-01 : f32
    %37 = vector.broadcast %cst_20 : f32 to vector<8x8xf32>
    %38 = arith.mulf %37, %1 : vector<8x8xf32>
    %39 = arith.mulf %38, %1 : vector<8x8xf32>
    %40 = arith.subf %39, %32 : vector<8x8xf32>
    %cst_21 = arith.constant 0.918938517 : f32
    %41 = vector.broadcast %cst_21 : f32 to vector<8x8xf32>
    %42 = arith.subf %40, %41 : vector<8x8xf32>
    %43 = arith.mulf %36, %36 : vector<8x8xf32>
    %cst_22 = arith.constant 1.000000e+00 : f32
    %44 = vector.broadcast %cst_22 : f32 to vector<8x8xf32>
    %45 = arith.subf %44, %43 : vector<8x8xf32>
    %cst_23 = arith.constant 1.000000e-07 : f32
    %46 = vector.broadcast %cst_23 : f32 to vector<8x8xf32>
    %47 = arith.addf %45, %46 : vector<8x8xf32>
    %48 = math.log %47 : vector<8x8xf32>
    %49 = arith.subf %42, %48 : vector<8x8xf32>
    %cst_24 = arith.constant dense<0.000000e+00> : vector<8xf32>
    %50 = vector.multi_reduction <add>, %49, %cst_24 [1] : vector<8x8xf32> to vector<8xf32>
    %51 = vector.shape_cast %50 : vector<8xf32> to vector<8x1xf32>
    %c0_25 = arith.constant 0 : index
    %c0_26 = arith.constant 0 : index
    %52 = vector.load %arg8[%c0_25, %c0_26] : memref<8x384xf32, #tpu.memory_space<vmem>>, vector<8x8xf32>
    tpu.vector_store %arg8[%c0_25, %c0_26], %36 {strides = array<i32>} : memref<8x384xf32, #tpu.memory_space<vmem>>, vector<8x8xf32>,
    %53 = math.tanh %24 : vector<8x8xf32>
    %c0_27 = arith.constant 0 : index
    %c128 = arith.constant 128 : index
    %54 = vector.load %arg8[%c0_27, %c128] : memref<8x384xf32, #tpu.memory_space<vmem>>, vector<8x8xf32>
    tpu.vector_store %arg8[%c0_27, %c128], %53 {strides = array<i32>} : memref<8x384xf32, #tpu.memory_space<vmem>>, vector<8x8xf32>,
    %c0_28 = arith.constant 0 : index
    %c256 = arith.constant 256 : index
    %55 = vector.load %arg8[%c0_28, %c256] : memref<8x384xf32, #tpu.memory_space<vmem>>, vector<8x1xf32>
    tpu.vector_store %arg8[%c0_28, %c256], %51 {strides = array<i32>} : memref<8x384xf32, #tpu.memory_space<vmem>>, vector<8x1xf32>,
    return
  }
  func.func @transform_0(%arg0: i32) -> (i32, i32) {
    %c0_i32 = arith.constant 0 : i32
    %c0_i32_0 = arith.constant 0 : i32
    return %arg0, %c0_i32 : i32, i32
  }
  func.func @transform_1(%arg0: i32) -> (i32, i32) {
    %c0_i32 = arith.constant 0 : i32
    %c0_i32_0 = arith.constant 0 : i32
    %c0_i32_1 = arith.constant 0 : i32
    return %c0_i32, %c0_i32_0 : i32, i32
  }
  func.func @transform_2(%arg0: i32) -> (i32, i32) {
    %c0_i32 = arith.constant 0 : i32
    %c0_i32_0 = arith.constant 0 : i32
    %c0_i32_1 = arith.constant 0 : i32
    return %c0_i32, %c0_i32_0 : i32, i32
  }
  func.func @transform_3(%arg0: i32) -> (i32, i32) {
    %c0_i32 = arith.constant 0 : i32
    %c0_i32_0 = arith.constant 0 : i32
    %c0_i32_1 = arith.constant 0 : i32
    return %c0_i32, %c0_i32_0 : i32, i32
  }
  func.func @transform_4(%arg0: i32) -> (i32, i32) {
    %c0_i32 = arith.constant 0 : i32
    %c0_i32_0 = arith.constant 0 : i32
    %c0_i32_1 = arith.constant 0 : i32
    return %c0_i32, %c0_i32_0 : i32, i32
  }
  func.func @transform_5(%arg0: i32) -> (i32, i32) {
    %c0_i32 = arith.constant 0 : i32
    %c0_i32_0 = arith.constant 0 : i32
    %c0_i32_1 = arith.constant 0 : i32
    return %c0_i32, %c0_i32_0 : i32, i32
  }
  func.func @transform_6(%arg0: i32) -> (i32, i32) {
    %c0_i32 = arith.constant 0 : i32
    %c0_i32_0 = arith.constant 0 : i32
    %c0_i32_1 = arith.constant 0 : i32
    return %c0_i32, %c0_i32_0 : i32, i32
  }
  func.func @transform_7(%arg0: i32) -> (i32, i32) {
    %c0_i32 = arith.constant 0 : i32
    %c0_i32_0 = arith.constant 0 : i32
    return %arg0, %c0_i32 : i32, i32
  }
}

</mosaic_0001>

<bundles_post_ra>
// kernel: actor_forward.1
= control target key start
LH: loop header
LB: loop body
LE: loop exit
PB: predicated region body
PF: predicated region fallthrough
CT: control target
= control target key end

     0   :  { %12 = vsyncpa [#allocation3], 0  ;;  %s2674_s0 = inlined_call_operand.vmem [shape: f32[8,128], index: 0, kind: input, shape index: {}]   ;;  %s2675_s1 = inlined_call_operand.hbm [shape: bf16[128,512], index: 1, kind: input, shape index: {}]   ;;  %s2676_s2 = inlined_call_operand.vmem [shape: f32[1,512], index: 2, kind: input, shape index: {}]   ;;  %s2677_s3 = inlined_call_operand.hbm [shape: bf16[512,512], index: 3, kind: input, shape index: {}]   ;;  %s2678_s4 = inlined_call_operand.vmem [shape: f32[1,512], index: 4, kind: input, shape index: {}]   ;;  %s2679_s5 = inlined_call_operand.hbm [shape: bf16[512,256], index: 5, kind: input, shape index: {}]   ;;  %s2680_s6 = inlined_call_operand.vmem [shape: f32[1,256], index: 6, kind: input, shape index: {}]   ;;  %s2681_s7 = inlined_call_operand.vmem [shape: f32[8,384], index: 7, kind: output, shape index: {}]  }
   0x1   :  { %13 = vsyncpa [#allocation5], 0  ;;  %s2514_s24 = smov [#allocation4]   ;;  %s2515_s26 = smov [#allocation2]  }
   0x2   :  { %s35_s25 = sshll.u32 %s2514_s24, 4  ;;  %s21_s27 = sshll.u32 %s2515_s26, 4  ;;  %s36_s25 = int_to_ptr.vmem [resolvable:$true] %s35_s25  ;;  %s2562_s27 = int_to_ptr.vmem [resolvable:$true] %s21_s27 }
   0x3   :  { %s2444_s30 = scalar_lea.hbm %s2677_s3, 16384 }
   0x4   :  { %p2445_p0 = scmp.ne.s32.totalorder %s2677_s3, %s2444_s30  ;;  %p2448_p1 = scmp.lt.u32.totalorder %s2444_s30, %s2677_s3 }
   0x6   :  { %p2450_p2 = pnand %p2448_p1, %p2445_p0 }
   0x8   :  { %2453 = shalt.err (!%p2450_p2)
}
   0x9   :  { %s2454_s12 = scalar_lea.vmem %s36_s25, 16384  ;;  %p2459_p4 = scmp.lt.s32.totalorder %s36_s25, %s36_s25 }
   0xa   :  { %p2455_p3 = scmp.ne.s32.totalorder %s36_s25, %s2454_s12  ;;  %p2460_p5 = scmp.lt.s32.totalorder %s2454_s12, %s2454_s12 }
   0xc   :  { %p2461_p6 = por %p2460_p5, %p2459_p4 }
   0xe   :  { %p2462_p7 = pnand %p2461_p6, %p2455_p3 }
  0x10   :  { %2465 = shalt.err (!%p2462_p7)
}
  0x11   :  { %s2516_s13 = smov 256   ;;  %s2517_s14 = smov 16  }
  0x12   :  { %41 = dma.hbm_to_vmem [thread:$0]  %s2677_s3, 16384, %s36_s25, [#allocation5], %s2516_s13, %s2516_s13, %s2517_s14  }
  0x13   :  { %s2466_s19 = scalar_lea.hbm %s2675_s1, 4096 }
  0x14   :  { %p2467_p8 = scmp.ne.s32.totalorder %s2675_s1, %s2466_s19  ;;  %p2470_p9 = scmp.lt.u32.totalorder %s2466_s19, %s2675_s1 }
  0x16   :  { %p2472_p10 = pnand %p2470_p9, %p2467_p8 }
  0x18   :  { %2475 = shalt.err (!%p2472_p10)
}
  0x19   :  { %s2476_s24 = scalar_lea.vmem %s2562_s27, 4096  ;;  %p2481_p12 = scmp.lt.s32.totalorder %s2562_s27, %s2562_s27 }
  0x1a   :  { %p2477_p11 = scmp.ne.s32.totalorder %s2562_s27, %s2476_s24  ;;  %p2482_p13 = scmp.lt.s32.totalorder %s2476_s24, %s2476_s24 }
  0x1c   :  { %p2483_p0 = por %p2482_p13, %p2481_p12 }
  0x1e   :  { %p2484_p1 = pnand %p2483_p0, %p2477_p11 }
  0x20   :  { %2487 = shalt.err (!%p2484_p1)
}
  0x21   :  { %27 = dma.hbm_to_vmem [thread:$0]  %s2675_s1, 4096, %s2562_s27, [#allocation3], %s2516_s13, %s2516_s13, %s2517_s14  }
  0x22   :  { %s2518_s26 = smov [#allocation6]   ;;  %s2488_s8 = scalar_lea.hbm %s2679_s5, 8192 }
  0x23   :  { %s49_s28 = sshll.u32 %s2518_s26, 4  ;;  %p2489_p2 = scmp.ne.s32.totalorder %s2679_s5, %s2488_s8  ;;  %s50_s28 = int_to_ptr.vmem [resolvable:$true] %s49_s28 }
  0x24   :  { %p2492_p3 = scmp.lt.u32.totalorder %s2488_s8, %s2679_s5 }
  0x26   :  { %p2494_p4 = pnand %p2492_p3, %p2489_p2 }
  0x28   :  { %2497 = shalt.err (!%p2494_p4)
}
  0x29   :  { %s2498_s15 = scalar_lea.vmem %s50_s28, 8192  ;;  %p2503_p6 = scmp.lt.s32.totalorder %s50_s28, %s50_s28 }
  0x2a   :  { %p2499_p5 = scmp.ne.s32.totalorder %s50_s28, %s2498_s15  ;;  %p2504_p7 = scmp.lt.s32.totalorder %s2498_s15, %s2498_s15 }
  0x2c   :  { %p2505_p8 = por %p2504_p7, %p2503_p6 }
  0x2e   :  { %p2506_p9 = pnand %p2505_p8, %p2499_p5 }
  0x30   :  { %2509 = shalt.err (!%p2506_p9)
}
  0x31   :  { %s2519_s1 = smov 128   ;;  %s2520_s27 = smov 8  }
  0x32   :  { %55 = dma.hbm_to_vmem [thread:$0]  %s2679_s5, 8192, %s50_s28, [#allocation5], %s2519_s1, %s2519_s1, %s2520_s27  }
  0x33   :  { %2510 = dma.done.wait [#allocation3], 4096  }
  0x34   :  { %2511 = vsyncadd [#allocation3], 4294963200 }
  0x35   :  { %2512 = dma.done.wait [#allocation5], 24576  }
  0x36   :  { %2513 = vsyncadd [#allocation5], 4294942720  ;;  %v2521_v0 = vmov 0   ;;  %v2097_v1 = vld [vmem:[#allocation2 + $0x4] ss:$16 sps:$4 sm:$0xff]   ;;  %vm1833_vm0 = vcmask 64512  }
  0x37   :  { %316 = vmatprep.mubr.bf16.mxu0 %v2521_v0  ;;  %357 = vmatprep.mubr.bf16.mxu1 %v2521_v0  ;;  %v2099_v2 = vld [vmem:[#allocation2] ss:$16 sps:$4 sm:$0xff]   ;;  %v2100_v3 = vld [vmem:[#allocation2 + $0xc] ss:$16 sps:$4 sm:$0xff]   ;;  %v2102_v4 = vld [vmem:[#allocation2 + $0x8] ss:$16 sps:$4 sm:$0xff]  }
  0x38   :  { %284 = vmatprep.subr.bf16.mxu0 %v2097_v1  ;;  %v2103_v5 = vld [vmem:[#allocation2 + $0x24] ss:$16 sps:$4 sm:$0xff]   ;;  %v2105_v6 = vld [vmem:[#allocation2 + $0x20] ss:$16 sps:$4 sm:$0xff]   ;;  %325 = vmatprep.subr.bf16.mxu1 %v2100_v3  ;;  %v2106_v7 = vld [vmem:[#allocation2 + $0x2c] ss:$16 sps:$4 sm:$0xff]  }
  0x39   :  { %285 = vmatpush1.bf16.msra.mxu0 %v2099_v2  ;;  %326 = vmatpush1.bf16.msra.mxu1 %v2102_v4  ;;  %v2108_v8 = vld [vmem:[#allocation2 + $0x28] ss:$16 sps:$4 sm:$0xff]   ;;  %v2109_v9 = vld [vmem:[#allocation2 + $0x44] ss:$16 sps:$4 sm:$0xff]   ;;  %v2111_v10 = vld [vmem:[#allocation2 + $0x40] ss:$16 sps:$4 sm:$0xff]  }
  0x3a   :  { %286 = vmatprep.subr.bf16.mxu0 %v2103_v5  ;;  %327 = vmatprep.subr.bf16.mxu1 %v2106_v7  ;;  %v2112_v11 = vld [vmem:[#allocation2 + $0x4c] ss:$16 sps:$4 sm:$0xff]   ;;  %v2115_v12 = vld [vmem:[#allocation2 + $0x64] ss:$16 sps:$4 sm:$0xff]   ;;  %v2114_v13 = vld [vmem:[#allocation2 + $0x48] ss:$16 sps:$4 sm:$0xff]  }
  0x3b   :  { %v2118_v14 = vld [vmem:[#allocation2 + $0x6c] ss:$16 sps:$4 sm:$0xff]   ;;  %v2117_v15 = vld [vmem:[#allocation2 + $0x60] ss:$16 sps:$4 sm:$0xff]   ;;  %v2121_v16 = vld [vmem:[#allocation2 + $0x84] ss:$16 sps:$4 sm:$0xff]  }
  0x3c   :  { %v2120_v17 = vld [vmem:[#allocation2 + $0x68] ss:$16 sps:$4 sm:$0xff]   ;;  %v2124_v18 = vld [vmem:[#allocation2 + $0x8c] ss:$16 sps:$4 sm:$0xff]   ;;  %v2123_v19 = vld [vmem:[#allocation2 + $0x80] ss:$16 sps:$4 sm:$0xff]  }
  0x3d   :  { %287 = vmatpush1.bf16.msra.mxu0 %v2105_v6  ;;  %328 = vmatpush1.bf16.msra.mxu1 %v2108_v8  ;;  %v2127_v20 = vld [vmem:[#allocation2 + $0xa4] ss:$16 sps:$4 sm:$0xff]   ;;  %v2126_v21 = vld [vmem:[#allocation2 + $0x88] ss:$16 sps:$4 sm:$0xff]   ;;  %v2130_v22 = vld [vmem:[#allocation2 + $0xac] ss:$16 sps:$4 sm:$0xff]  }
  0x3e   :  { %288 = vmatprep.subr.bf16.mxu0 %v2109_v9  ;;  %329 = vmatprep.subr.bf16.mxu1 %v2112_v11  ;;  %v2129_v23 = vld [vmem:[#allocation2 + $0xa0] ss:$16 sps:$4 sm:$0xff]   ;;  %v2133_v24 = vld [vmem:[#allocation2 + $0xc4] ss:$16 sps:$4 sm:$0xff]   ;;  %v2132_v25 = vld [vmem:[#allocation2 + $0xa8] ss:$16 sps:$4 sm:$0xff]  }
  0x3f   :  { %v2136_v26 = vld [vmem:[#allocation2 + $0xcc] ss:$16 sps:$4 sm:$0xff]   ;;  %v2135_v27 = vld [vmem:[#allocation2 + $0xc0] ss:$16 sps:$4 sm:$0xff]   ;;  %v2139_v28 = vld [vmem:[#allocation2 + $0xe4] ss:$16 sps:$4 sm:$0xff]  }
  0x40   :  { %v2138_v29 = vld [vmem:[#allocation2 + $0xc8] ss:$16 sps:$4 sm:$0xff]   ;;  %v2141_v30 = vld [vmem:[#allocation2 + $0xe0] ss:$16 sps:$4 sm:$0xff]   ;;  %v2142_v31 = vld [vmem:[#allocation2 + $0xec] ss:$16 sps:$4 sm:$0xff]  }
  0x41   :  { %289 = vmatpush1.bf16.msra.mxu0 %v2111_v10  ;;  %330 = vmatpush1.bf16.msra.mxu1 %v2114_v13  ;;  %v68_v32 = vld [vmem:[%s2674_s0] sm:$0xff]  ;;  %v2144_v34 = vld [vmem:[#allocation2 + $0xe8] ss:$16 sps:$4 sm:$0xff]   ;;  %vm1840_vm1 = vcmask 7168  }
  0x42   :  { %290 = vmatprep.subr.bf16.mxu0 %v2115_v12  ;;  %331 = vmatprep.subr.bf16.mxu1 %v2118_v14  ;;  %v2150_v33 = vld [vmem:[#allocation4 + $0x204] ss:$16 sps:$4 sm:$0xff]   ;;  %v69_v35 = vpack.c.bf16 %v68_v32, %v68_v32  ;;  %v2148_v37 = vld [vmem:[#allocation4 + $0x200] ss:$16 sps:$4 sm:$0xff]  }
  0x43   :  { %v2147_v36 = vld [vmem:[#allocation4 + $0x4] ss:$16 sps:$4 sm:$0xff]   ;;  %v2145_v39 = vld [vmem:[#allocation4] ss:$16 sps:$4 sm:$0xff]  }
  0x44   :  { %v2156_v38 = vld [vmem:[#allocation4 + $0x224] ss:$16 sps:$4 sm:$0xff]   ;;  %v2154_v41 = vld [vmem:[#allocation4 + $0x220] ss:$16 sps:$4 sm:$0xff]  }
  0x45   :  { %291 = vmatpush1.bf16.msra.mxu0 %v2117_v15  ;;  %332 = vmatpush1.bf16.msra.mxu1 %v2120_v17  ;;  %v2153_v40 = vld [vmem:[#allocation4 + $0x24] ss:$16 sps:$4 sm:$0xff]   ;;  %v2151_v43 = vld [vmem:[#allocation4 + $0x20] ss:$16 sps:$4 sm:$0xff]  }
  0x46   :  { %292 = vmatprep.subr.bf16.mxu0 %v2121_v16  ;;  %333 = vmatprep.subr.bf16.mxu1 %v2124_v18  ;;  %v2162_v42 = vld [vmem:[#allocation4 + $0x244] ss:$16 sps:$4 sm:$0xff]   ;;  %v2160_v45 = vld [vmem:[#allocation4 + $0x240] ss:$16 sps:$4 sm:$0xff]  }
  0x47   :  { %v2159_v44 = vld [vmem:[#allocation4 + $0x44] ss:$16 sps:$4 sm:$0xff]   ;;  %v2157_v47 = vld [vmem:[#allocation4 + $0x40] ss:$16 sps:$4 sm:$0xff]  }
  0x48   :  { %v2168_v46 = vld [vmem:[#allocation4 + $0x264] ss:$16 sps:$4 sm:$0xff]   ;;  %v2166_v49 = vld [vmem:[#allocation4 + $0x260] ss:$16 sps:$4 sm:$0xff]  }
  0x49   :  { %293 = vmatpush1.bf16.msra.mxu0 %v2123_v19  ;;  %334 = vmatpush1.bf16.msra.mxu1 %v2126_v21  ;;  %v2165_v48 = vld [vmem:[#allocation4 + $0x64] ss:$16 sps:$4 sm:$0xff]   ;;  %v2163_v51 = vld [vmem:[#allocation4 + $0x60] ss:$16 sps:$4 sm:$0xff]  }
  0x4a   :  { %294 = vmatprep.subr.bf16.mxu0 %v2127_v20  ;;  %335 = vmatprep.subr.bf16.mxu1 %v2130_v22  ;;  %v2174_v50 = vld [vmem:[#allocation4 + $0x284] ss:$16 sps:$4 sm:$0xff]   ;;  %v2172_v53 = vld [vmem:[#allocation4 + $0x280] ss:$16 sps:$4 sm:$0xff]  }
  0x4b   :  { %v2171_v52 = vld [vmem:[#allocation4 + $0x84] ss:$16 sps:$4 sm:$0xff]   ;;  %v2169_v55 = vld [vmem:[#allocation4 + $0x80] ss:$16 sps:$4 sm:$0xff]  }
  0x4c   :  { %v2180_v54 = vld [vmem:[#allocation4 + $0x2a4] ss:$16 sps:$4 sm:$0xff]   ;;  %v2178_v57 = vld [vmem:[#allocation4 + $0x2a0] ss:$16 sps:$4 sm:$0xff]  }
  0x4d   :  { %295 = vmatpush1.bf16.msra.mxu0 %v2129_v23  ;;  %336 = vmatpush1.bf16.msra.mxu1 %v2132_v25  ;;  %v2177_v56 = vld [vmem:[#allocation4 + $0xa4] ss:$16 sps:$4 sm:$0xff]   ;;  %v2175_v59 = vld [vmem:[#allocation4 + $0xa0] ss:$16 sps:$4 sm:$0xff]  }
  0x4e   :  { %296 = vmatprep.subr.bf16.mxu0 %v2133_v24  ;;  %337 = vmatprep.subr.bf16.mxu1 %v2136_v26  ;;  %v2186_v58 = vld [vmem:[#allocation4 + $0x2c4] ss:$16 sps:$4 sm:$0xff]   ;;  %v2184_v61 = vld [vmem:[#allocation4 + $0x2c0] ss:$16 sps:$4 sm:$0xff]  }
  0x4f   :  { %v2183_v60 = vld [vmem:[#allocation4 + $0xc4] ss:$16 sps:$4 sm:$0xff]   ;;  %v2181_v63 = vld [vmem:[#allocation4 + $0xc0] ss:$16 sps:$4 sm:$0xff]  }
  0x50   :  { %v2192_v62 = vld [vmem:[#allocation4 + $0x2e4] ss:$16 sps:$4 sm:$0xff]   ;;  %v2190_v1 = vld [vmem:[#allocation4 + $0x2e0] ss:$16 sps:$4 sm:$0xff]  }
  0x51   :  { %297 = vmatpush1.bf16.msra.mxu0 %v2135_v27  ;;  %338 = vmatpush1.bf16.msra.mxu1 %v2138_v29  ;;  %v2189_v0 = vld [vmem:[#allocation4 + $0xe4] ss:$16 sps:$4 sm:$0xff]   ;;  %v2187_v2 = vld [vmem:[#allocation4 + $0xe0] ss:$16 sps:$4 sm:$0xff]  }
  0x52   :  { %298 = vmatprep.subr.bf16.mxu0 %v2139_v28  ;;  %339 = vmatprep.subr.bf16.mxu1 %v2142_v31  ;;  %v2198_v3 = vld [vmem:[#allocation4 + $0x304] ss:$16 sps:$4 sm:$0xff]   ;;  %v2196_v5 = vld [vmem:[#allocation4 + $0x300] ss:$16 sps:$4 sm:$0xff]  }
  0x53   :  { %v2195_v4 = vld [vmem:[#allocation4 + $0x104] ss:$16 sps:$4 sm:$0xff]   ;;  %v2193_v7 = vld [vmem:[#allocation4 + $0x100] ss:$16 sps:$4 sm:$0xff]  }
  0x54   :  { %v2204_v6 = vld [vmem:[#allocation4 + $0x324] ss:$16 sps:$4 sm:$0xff]   ;;  %v2202_v9 = vld [vmem:[#allocation4 + $0x320] ss:$16 sps:$4 sm:$0xff]  }
  0x55   :  { %299 = vmatpush1.bf16.msra.mxu0 %v2141_v30  ;;  %340 = vmatpush1.bf16.msra.mxu1 %v2144_v34  ;;  %v2201_v8 = vld [vmem:[#allocation4 + $0x124] ss:$16 sps:$4 sm:$0xff]   ;;  %v2199_v11 = vld [vmem:[#allocation4 + $0x120] ss:$16 sps:$4 sm:$0xff]  }
  0x56   :  { %1205 = vmatprep.subr.bf16.mxu0 %v2150_v33  ;;  %1164 = vmatprep.subr.bf16.mxu1 %v2147_v36  ;;  %v2210_v10 = vld [vmem:[#allocation4 + $0x344] ss:$16 sps:$4 sm:$0xff]   ;;  %v2208_v13 = vld [vmem:[#allocation4 + $0x340] ss:$16 sps:$4 sm:$0xff]   ;;  %v104_v36 = vlaneseq }
  0x57   :  { %v2207_v12 = vld [vmem:[#allocation4 + $0x144] ss:$16 sps:$4 sm:$0xff]   ;;  %v2205_v15 = vld [vmem:[#allocation4 + $0x140] ss:$16 sps:$4 sm:$0xff]  }
  0x58   :  { %317 = vmatmul.mubr.bf16.vlgmr.msra.gmra.mrb[0].mxu0 %v69_v35  ;;  %358 = vmatmul.mubr.bf16.vlgmr.msra.gmra.mrb[0].mxu1 %v69_v35  ;;  %v2216_v14 = vld [vmem:[#allocation4 + $0x364] ss:$16 sps:$4 sm:$0xff]   ;;  %v2214_v17 = vld [vmem:[#allocation4 + $0x360] ss:$16 sps:$4 sm:$0xff]   ;;  %v2243_v35 = vld [vmem:[#allocation4 + $0xc] ss:$16 sps:$4 sm:$0xff]  }
  0x59   :  { %1206 = vmatpush1.bf16.msra.mxu0 %v2148_v37  ;;  %1165 = vmatpush1.bf16.msra.mxu1 %v2145_v39  ;;  %v2213_v16 = vld [vmem:[#allocation4 + $0x164] ss:$16 sps:$4 sm:$0xff]   ;;  %v2211_v19 = vld [vmem:[#allocation4 + $0x160] ss:$16 sps:$4 sm:$0xff]   ;;  %v2608_v37 = vshrl.u32 %v104_v36, 7 }
  0x5a   :  { %1207 = vmatprep.subr.bf16.mxu0 %v2156_v38  ;;  %1166 = vmatprep.subr.bf16.mxu1 %v2153_v40  ;;  %v2222_v18 = vld [vmem:[#allocation4 + $0x384] ss:$16 sps:$4 sm:$0xff]   ;;  %v2220_v21 = vld [vmem:[#allocation4 + $0x380] ss:$16 sps:$4 sm:$0xff]  }
  0x5b   :  { %v2219_v20 = vld [vmem:[#allocation4 + $0x184] ss:$16 sps:$4 sm:$0xff]   ;;  %v2217_v23 = vld [vmem:[#allocation4 + $0x180] ss:$16 sps:$4 sm:$0xff]   ;;  %v2611_v38 = vsub.s32 0, %v2608_v37  ;;  %v2617_v40 = vsub.s32 1, %v2608_v37 }
  0x5c   :  { %v2228_v22 = vld [vmem:[#allocation4 + $0x3a4] ss:$16 sps:$4 sm:$0xff]   ;;  %v2226_v25 = vld [vmem:[#allocation4 + $0x3a0] ss:$16 sps:$4 sm:$0xff]  }
  0x5d   :  { %1208 = vmatpush1.bf16.msra.mxu0 %v2154_v41  ;;  %1167 = vmatpush1.bf16.msra.mxu1 %v2151_v43  ;;  %v2225_v24 = vld [vmem:[#allocation4 + $0x1a4] ss:$16 sps:$4 sm:$0xff]   ;;  %v2223_v26 = vld [vmem:[#allocation4 + $0x1a0] ss:$16 sps:$4 sm:$0xff]   ;;  %v114_v41 = vsub.s32 2, %v2608_v37 }
  0x5e   :  { %1209 = vmatprep.subr.bf16.mxu0 %v2162_v42  ;;  %1168 = vmatprep.subr.bf16.mxu1 %v2159_v44  ;;  %v2231_v27 = vld [vmem:[#allocation4 + $0x1c4] ss:$16 sps:$4 sm:$0xff]   ;;  %v2229_v28 = vld [vmem:[#allocation4 + $0x1c0] ss:$16 sps:$4 sm:$0xff]   ;;  %v118_v42 = vsub.s32 3, %v2608_v37 }
  0x5f   :  { %v2234_v29 = vld [vmem:[#allocation4 + $0x3c4] ss:$16 sps:$4 sm:$0xff]   ;;  %v2232_v30 = vld [vmem:[#allocation4 + $0x3c0] ss:$16 sps:$4 sm:$0xff]  }
  0x60   :  { %v2237_v31 = vld [vmem:[#allocation4 + $0x1e4] ss:$16 sps:$4 sm:$0xff]   ;;  %v2235_v32 = vld [vmem:[#allocation4 + $0x1e0] ss:$16 sps:$4 sm:$0xff]  }
  0x61   :  { %1210 = vmatpush1.bf16.msra.mxu0 %v2160_v45  ;;  %1169 = vmatpush1.bf16.msra.mxu1 %v2157_v47  ;;  %v2240_v33 = vld [vmem:[#allocation4 + $0x3e4] ss:$16 sps:$4 sm:$0xff]   ;;  %v2238_v34 = vld [vmem:[#allocation4 + $0x3e0] ss:$16 sps:$4 sm:$0xff]  }
  0x62   :  { %1211 = vmatprep.subr.bf16.mxu0 %v2168_v46  ;;  %1170 = vmatprep.subr.bf16.mxu1 %v2165_v48  ;;  %v102_v39 = vld [vmem:[%s2676_s2] sm:$0xf]  ;;  %v2363_v36 = vld [vmem:[#allocation6 + $0x84] ss:$8 sps:$4 sm:$0xff]  }
  0x63   :  { %v107_v43 = vrot.slane %v102_v39, %v2611_v38  ;;  %v111_v44 = vrot.slane %v102_v39, %v2617_v40  ;;  %v115_v45 = vrot.slane %v102_v39, %v114_v41  ;;  %v119_v47 = vrot.slane %v102_v39, %v118_v42  ;;  %v2270_v39 = vld [vmem:[#allocation4 + $0x12c] ss:$16 sps:$4 sm:$0xff]  }
  0x65   :  { %1212 = vmatpush1.bf16.msra.mxu0 %v2166_v49  ;;  %1171 = vmatpush1.bf16.msra.mxu1 %v2163_v51 }
  0x66   :  { %1213 = vmatprep.subr.bf16.mxu0 %v2174_v50  ;;  %1172 = vmatprep.subr.bf16.mxu1 %v2171_v52 }
  0x69   :  { %1214 = vmatpush1.bf16.msra.mxu0 %v2172_v53  ;;  %1173 = vmatpush1.bf16.msra.mxu1 %v2169_v55 }
  0x6a   :  { %1215 = vmatprep.subr.bf16.mxu0 %v2180_v54  ;;  %1174 = vmatprep.subr.bf16.mxu1 %v2177_v56 }
  0x6d   :  { %1216 = vmatpush1.bf16.msra.mxu0 %v2178_v57  ;;  %1175 = vmatpush1.bf16.msra.mxu1 %v2175_v59 }
  0x6e   :  { %1217 = vmatprep.subr.bf16.mxu0 %v2186_v58  ;;  %1176 = vmatprep.subr.bf16.mxu1 %v2183_v60 }
  0x71   :  { %1218 = vmatpush1.bf16.msra.mxu0 %v2184_v61  ;;  %1177 = vmatpush1.bf16.msra.mxu1 %v2181_v63 }
  0x72   :  { %1219 = vmatprep.subr.bf16.mxu0 %v2192_v62  ;;  %1178 = vmatprep.subr.bf16.mxu1 %v2189_v0  ;;  %v2241_v0 = vld [vmem:[#allocation4 + $0x8] ss:$16 sps:$4 sm:$0xff]  }
  0x75   :  { %1220 = vmatpush1.bf16.msra.mxu0 %v2190_v1  ;;  %1179 = vmatpush1.bf16.msra.mxu1 %v2187_v2 }
  0x76   :  { %1221 = vmatprep.subr.bf16.mxu0 %v2198_v3  ;;  %1180 = vmatprep.subr.bf16.mxu1 %v2195_v4  ;;  %v2246_v4 = vld [vmem:[#allocation4 + $0x2c] ss:$16 sps:$4 sm:$0xff]  }
  0x79   :  { %1222 = vmatpush1.bf16.msra.mxu0 %v2196_v5  ;;  %1181 = vmatpush1.bf16.msra.mxu1 %v2193_v7  ;;  %v2337_v5 = vld [vmem:[#allocation6] ss:$8 sps:$4 sm:$0xff]  }
  0x7a   :  { %1223 = vmatprep.subr.bf16.mxu0 %v2204_v6  ;;  %1182 = vmatprep.subr.bf16.mxu1 %v2201_v8  ;;  %v2339_v6 = vld [vmem:[#allocation6 + $0x4] ss:$8 sps:$4 sm:$0xff]   ;;  %v2244_v7 = vld [vmem:[#allocation4 + $0x28] ss:$16 sps:$4 sm:$0xff]   ;;  %v2342_v8 = vld [vmem:[#allocation6 + $0x14] ss:$8 sps:$4 sm:$0xff]  }
  0x7d   :  { %1224 = vmatpush1.bf16.msra.mxu0 %v2202_v9  ;;  %1183 = vmatpush1.bf16.msra.mxu1 %v2199_v11  ;;  %v2249_v9 = vld [vmem:[#allocation4 + $0x4c] ss:$16 sps:$4 sm:$0xff]   ;;  %v2247_v11 = vld [vmem:[#allocation4 + $0x48] ss:$16 sps:$4 sm:$0xff]  }
  0x7e   :  { %1225 = vmatprep.subr.bf16.mxu0 %v2210_v10  ;;  %1184 = vmatprep.subr.bf16.mxu1 %v2207_v12  ;;  %v2340_v10 = vld [vmem:[#allocation6 + $0x10] ss:$8 sps:$4 sm:$0xff]   ;;  %v2345_v12 = vld [vmem:[#allocation6 + $0x24] ss:$8 sps:$4 sm:$0xff]  }
  0x81   :  { %1226 = vmatpush1.bf16.msra.mxu0 %v2208_v13  ;;  %1185 = vmatpush1.bf16.msra.mxu1 %v2205_v15  ;;  %v2252_v13 = vld [vmem:[#allocation4 + $0x6c] ss:$16 sps:$4 sm:$0xff]   ;;  %v2250_v15 = vld [vmem:[#allocation4 + $0x68] ss:$16 sps:$4 sm:$0xff]  }
  0x82   :  { %1227 = vmatprep.subr.bf16.mxu0 %v2216_v14  ;;  %1186 = vmatprep.subr.bf16.mxu1 %v2213_v16  ;;  %v2343_v14 = vld [vmem:[#allocation6 + $0x20] ss:$8 sps:$4 sm:$0xff]   ;;  %v2348_v16 = vld [vmem:[#allocation6 + $0x34] ss:$8 sps:$4 sm:$0xff]  }
  0x85   :  { %1228 = vmatpush1.bf16.msra.mxu0 %v2214_v17  ;;  %1187 = vmatpush1.bf16.msra.mxu1 %v2211_v19  ;;  %v2255_v17 = vld [vmem:[#allocation4 + $0x8c] ss:$16 sps:$4 sm:$0xff]   ;;  %v2253_v19 = vld [vmem:[#allocation4 + $0x88] ss:$16 sps:$4 sm:$0xff]  }
  0x86   :  { %1229 = vmatprep.subr.bf16.mxu0 %v2222_v18  ;;  %1188 = vmatprep.subr.bf16.mxu1 %v2219_v20  ;;  %v2346_v18 = vld [vmem:[#allocation6 + $0x30] ss:$8 sps:$4 sm:$0xff]   ;;  %v2351_v20 = vld [vmem:[#allocation6 + $0x44] ss:$8 sps:$4 sm:$0xff]  }
  0x89   :  { %1230 = vmatpush1.bf16.msra.mxu0 %v2220_v21  ;;  %1189 = vmatpush1.bf16.msra.mxu1 %v2217_v23  ;;  %v2258_v21 = vld [vmem:[#allocation4 + $0xac] ss:$16 sps:$4 sm:$0xff]   ;;  %v2256_v23 = vld [vmem:[#allocation4 + $0xa8] ss:$16 sps:$4 sm:$0xff]  }
  0x8a   :  { %1231 = vmatprep.subr.bf16.mxu0 %v2228_v22  ;;  %1190 = vmatprep.subr.bf16.mxu1 %v2225_v24  ;;  %v2349_v22 = vld [vmem:[#allocation6 + $0x40] ss:$8 sps:$4 sm:$0xff]   ;;  %v2354_v24 = vld [vmem:[#allocation6 + $0x54] ss:$8 sps:$4 sm:$0xff]  }
  0x8d   :  { %1232 = vmatpush1.bf16.msra.mxu0 %v2226_v25  ;;  %1191 = vmatpush1.bf16.msra.mxu1 %v2223_v26  ;;  %v2261_v25 = vld [vmem:[#allocation4 + $0xcc] ss:$16 sps:$4 sm:$0xff]   ;;  %v2352_v26 = vld [vmem:[#allocation6 + $0x50] ss:$8 sps:$4 sm:$0xff]  }
  0x8e   :  { %1192 = vmatprep.subr.bf16.mxu1 %v2231_v27  ;;  %1233 = vmatprep.subr.bf16.mxu0 %v2234_v29  ;;  %v2259_v27 = vld [vmem:[#allocation4 + $0xc8] ss:$16 sps:$4 sm:$0xff]   ;;  %v2264_v29 = vld [vmem:[#allocation4 + $0xec] ss:$16 sps:$4 sm:$0xff]  }
  0x91   :  { %1193 = vmatpush1.bf16.msra.mxu1 %v2229_v28  ;;  %1234 = vmatpush1.bf16.msra.mxu0 %v2232_v30  ;;  %v2357_v28 = vld [vmem:[#allocation6 + $0x64] ss:$8 sps:$4 sm:$0xff]   ;;  %v2355_v30 = vld [vmem:[#allocation6 + $0x60] ss:$8 sps:$4 sm:$0xff]  }
  0x92   :  { %1194 = vmatprep.subr.bf16.mxu1 %v2237_v31  ;;  %1235 = vmatprep.subr.bf16.mxu0 %v2240_v33  ;;  %v2262_v31 = vld [vmem:[#allocation4 + $0xe8] ss:$16 sps:$4 sm:$0xff]   ;;  %v2267_v33 = vld [vmem:[#allocation4 + $0x10c] ss:$16 sps:$4 sm:$0xff]  }
  0x95   :  { %1195 = vmatpush1.bf16.msra.mxu1 %v2235_v32  ;;  %1236 = vmatpush1.bf16.msra.mxu0 %v2238_v34  ;;  %v2360_v32 = vld [vmem:[#allocation6 + $0x74] ss:$8 sps:$4 sm:$0xff]   ;;  %v2358_v34 = vld [vmem:[#allocation6 + $0x70] ss:$8 sps:$4 sm:$0xff]  }
  0x96   :  { %1246 = vmatprep.subr.bf16.mxu1 %v2243_v35  ;;  %1732 = vmatprep.subr.bf16.mxu0 %v2339_v6  ;;  %v2265_v35 = vld [vmem:[#allocation4 + $0x108] ss:$16 sps:$4 sm:$0xff]   ;;  %v2291_v6 = vld [vmem:[#allocation4 + $0x20c] ss:$16 sps:$4 sm:$0xff]  }
 0x12b   :  { %v318_v46 = vpop.f32.mrb[0].mxu0  ;;  %v359_v52 = vpop.f32.mrb[0].mxu1 }
 0x12c   :  { %v319_v48 = vadd.f32 %v318_v46, %v107_v43  ;;  %v320_v49 = vpop.f32.mrb[1].mxu0  ;;  %v360_v54 = vadd.f32 %v359_v52, %v115_v45  ;;  %v361_v56 = vpop.f32.mrb[1].mxu1  ;;  %v2361_v43 = vld [vmem:[#allocation6 + $0x80] ss:$8 sps:$4 sm:$0xff]   ;;  %v2366_v45 = vld [vmem:[#allocation6 + $0x94] ss:$8 sps:$4 sm:$0xff]  }
 0x12d   :  { %v321_v50 = vadd.f32 %v320_v49, %v111_v44  ;;  %v322_v51 = vpop.f32.mrb[2].mxu0  ;;  %v362_v58 = vadd.f32 %v361_v56, %v119_v47  ;;  %v363_v59 = vpop.f32.mrb[2].mxu1  ;;  %v2268_v44 = vld [vmem:[#allocation4 + $0x128] ss:$16 sps:$4 sm:$0xff]   ;;  %v2273_v46 = vld [vmem:[#allocation4 + $0x14c] ss:$16 sps:$4 sm:$0xff]  }
 0x12e   :  { %v366_v53 = vmax.f32 %v319_v48, 0.0  ;;  %v323_v55 = vpop.f32.mrb[3].mxu0  ;;  %v368_v60 = vmax.f32 %v360_v54, 0.0  ;;  %v364_v61 = vpop.f32.mrb[3].mxu1  ;;  %v2364_v47 = vld [vmem:[#allocation6 + $0x90] ss:$8 sps:$4 sm:$0xff]  }
 0x12f   :  { %v367_v57 = vmax.f32 %v321_v50, 0.0  ;;  %v369_v63 = vmax.f32 %v362_v58, 0.0  ;;  %v2271_v48 = vld [vmem:[#allocation4 + $0x148] ss:$16 sps:$4 sm:$0xff]   ;;  %v2369_v49 = vld [vmem:[#allocation6 + $0xa4] ss:$8 sps:$4 sm:$0xff]  }
 0x130   :  { %v2627_v1 = vpack.c.bf16 %v366_v53, %v366_v53  ;;  %v2629_v2 = vpack.c.bf16 %v368_v60, %v368_v60  ;;  %v2276_v50 = vld [vmem:[#allocation4 + $0x16c] ss:$16 sps:$4 sm:$0xff]   ;;  %v2367_v51 = vld [vmem:[#allocation6 + $0xa0] ss:$8 sps:$4 sm:$0xff]   ;;  %v2370_v55 = vld [vmem:[#allocation6 + $0xb0] ss:$8 sps:$4 sm:$0xff]  }
 0x131   :  { %v371_v62 = vpack.c.bf16 %v367_v57, %v367_v57  ;;  %v2631_v3 = vpack.c.bf16 %v369_v63, %v369_v63  ;;  %v2274_v52 = vld [vmem:[#allocation4 + $0x168] ss:$16 sps:$4 sm:$0xff]   ;;  %v2372_v53 = vld [vmem:[#allocation6 + $0xb4] ss:$8 sps:$4 sm:$0xff]   ;;  %v2375_v57 = vld [vmem:[#allocation6 + $0xc4] ss:$8 sps:$4 sm:$0xff]  }
 0x132   :  { %v2279_v54 = vld [vmem:[#allocation4 + $0x18c] ss:$16 sps:$4 sm:$0xff]   ;;  %v2277_v56 = vld [vmem:[#allocation4 + $0x188] ss:$16 sps:$4 sm:$0xff]  }
 0x133   :  { %1196 = vmatprep.mubr.bf16.mxu1 %v371_v62  ;;  %1237 = vmatprep.mubr.bf16.mxu0 %v2631_v3  ;;  %v2282_v58 = vld [vmem:[#allocation4 + $0x1ac] ss:$16 sps:$4 sm:$0xff]   ;;  %v2373_v59 = vld [vmem:[#allocation6 + $0xc0] ss:$8 sps:$4 sm:$0xff]   ;;  %v2376_v63 = vld [vmem:[#allocation6 + $0xd0] ss:$8 sps:$4 sm:$0xff]  }
 0x134   :  { %1197 = vmatmul.mubr.bf16.vlgmr.msra.gmra.mrb[4].mxu1 %v2627_v1  ;;  %1238 = vmatmul.mubr.bf16.vlgmr.msra.gmra.mrb[4].mxu0 %v2629_v2  ;;  %v2280_v60 = vld [vmem:[#allocation4 + $0x1a8] ss:$16 sps:$4 sm:$0xff]   ;;  %v2378_v61 = vld [vmem:[#allocation6 + $0xd4] ss:$8 sps:$4 sm:$0xff]  }
 0x135   :  { %1247 = vmatpush1.bf16.msra.mxu1 %v2241_v0  ;;  %1278 = vmatprep.mubr.bf16.mxu1 %v371_v62  ;;  %v2285_v62 = vld [vmem:[#allocation4 + $0x1cc] ss:$16 sps:$4 sm:$0xff]   ;;  %v2283_v0 = vld [vmem:[#allocation4 + $0x1c8] ss:$16 sps:$4 sm:$0xff]  }
 0x136   :  { %1248 = vmatprep.subr.bf16.mxu1 %v2246_v4  ;;  %1733 = vmatpush1.bf16.msra.mxu0 %v2337_v5  ;;  %v2288_v4 = vld [vmem:[#allocation4 + $0x1ec] ss:$16 sps:$4 sm:$0xff]   ;;  %v2286_v5 = vld [vmem:[#allocation4 + $0x1e8] ss:$16 sps:$4 sm:$0xff]  }
 0x137   :  { %1734 = vmatprep.subr.bf16.mxu0 %v2342_v8  ;;  %v2294_v8 = vld [vmem:[#allocation4 + $0x22c] ss:$16 sps:$4 sm:$0xff]  }
 0x139   :  { %1249 = vmatpush1.bf16.msra.mxu1 %v2244_v7  ;;  %v2289_v7 = vld [vmem:[#allocation4 + $0x208] ss:$16 sps:$4 sm:$0xff]  }
 0x13a   :  { %1250 = vmatprep.subr.bf16.mxu1 %v2249_v9  ;;  %1735 = vmatpush1.bf16.msra.mxu0 %v2340_v10  ;;  %v2292_v9 = vld [vmem:[#allocation4 + $0x228] ss:$16 sps:$4 sm:$0xff]   ;;  %v2297_v10 = vld [vmem:[#allocation4 + $0x24c] ss:$16 sps:$4 sm:$0xff]  }
 0x13b   :  { %1736 = vmatprep.subr.bf16.mxu0 %v2345_v12  ;;  %v2300_v12 = vld [vmem:[#allocation4 + $0x26c] ss:$16 sps:$4 sm:$0xff]  }
 0x13d   :  { %1251 = vmatpush1.bf16.msra.mxu1 %v2247_v11  ;;  %v2295_v11 = vld [vmem:[#allocation4 + $0x248] ss:$16 sps:$4 sm:$0xff]  }
 0x13e   :  { %1252 = vmatprep.subr.bf16.mxu1 %v2252_v13  ;;  %1737 = vmatpush1.bf16.msra.mxu0 %v2343_v14  ;;  %v2298_v13 = vld [vmem:[#allocation4 + $0x268] ss:$16 sps:$4 sm:$0xff]   ;;  %v2303_v14 = vld [vmem:[#allocation4 + $0x28c] ss:$16 sps:$4 sm:$0xff]  }
 0x13f   :  { %1738 = vmatprep.subr.bf16.mxu0 %v2348_v16  ;;  %v2306_v16 = vld [vmem:[#allocation4 + $0x2ac] ss:$16 sps:$4 sm:$0xff]  }
 0x141   :  { %1253 = vmatpush1.bf16.msra.mxu1 %v2250_v15  ;;  %v2301_v15 = vld [vmem:[#allocation4 + $0x288] ss:$16 sps:$4 sm:$0xff]  }
 0x142   :  { %1254 = vmatprep.subr.bf16.mxu1 %v2255_v17  ;;  %1739 = vmatpush1.bf16.msra.mxu0 %v2346_v18  ;;  %v2309_v17 = vld [vmem:[#allocation4 + $0x2cc] ss:$16 sps:$4 sm:$0xff]  }
 0x143   :  { %1740 = vmatprep.subr.bf16.mxu0 %v2351_v20  ;;  %v2381_v18 = vld [vmem:[#allocation6 + $0xe4] ss:$8 sps:$4 sm:$0xff]   ;;  %v2379_v20 = vld [vmem:[#allocation6 + $0xe0] ss:$8 sps:$4 sm:$0xff]  }
 0x145   :  { %1255 = vmatpush1.bf16.msra.mxu1 %v2253_v19  ;;  %v2312_v19 = vld [vmem:[#allocation4 + $0x2ec] ss:$16 sps:$4 sm:$0xff]  }
 0x146   :  { %1256 = vmatprep.subr.bf16.mxu1 %v2258_v21  ;;  %1741 = vmatpush1.bf16.msra.mxu0 %v2349_v22  ;;  %v2310_v21 = vld [vmem:[#allocation4 + $0x2e8] ss:$16 sps:$4 sm:$0xff]   ;;  %v2384_v22 = vld [vmem:[#allocation6 + $0xf4] ss:$8 sps:$4 sm:$0xff]  }
 0x147   :  { %1742 = vmatprep.subr.bf16.mxu0 %v2354_v24  ;;  %v2382_v24 = vld [vmem:[#allocation6 + $0xf0] ss:$8 sps:$4 sm:$0xff]  }
 0x149   :  { %1257 = vmatpush1.bf16.msra.mxu1 %v2256_v23  ;;  %v2315_v23 = vld [vmem:[#allocation4 + $0x30c] ss:$16 sps:$4 sm:$0xff]  }
 0x14a   :  { %1258 = vmatprep.subr.bf16.mxu1 %v2261_v25  ;;  %1743 = vmatpush1.bf16.msra.mxu0 %v2352_v26  ;;  %v2313_v25 = vld [vmem:[#allocation4 + $0x308] ss:$16 sps:$4 sm:$0xff]   ;;  %v2318_v26 = vld [vmem:[#allocation4 + $0x32c] ss:$16 sps:$4 sm:$0xff]  }
 0x14b   :  { %1744 = vmatprep.subr.bf16.mxu0 %v2357_v28  ;;  %v2316_v28 = vld [vmem:[#allocation4 + $0x328] ss:$16 sps:$4 sm:$0xff]  }
 0x14d   :  { %1259 = vmatpush1.bf16.msra.mxu1 %v2259_v27  ;;  %v2387_v27 = vld [vmem:[#allocation6 + $0x104] ss:$8 sps:$4 sm:$0xff]  }
 0x14e   :  { %1260 = vmatprep.subr.bf16.mxu1 %v2264_v29  ;;  %1745 = vmatpush1.bf16.msra.mxu0 %v2355_v30  ;;  %v2321_v29 = vld [vmem:[#allocation4 + $0x34c] ss:$16 sps:$4 sm:$0xff]   ;;  %v2319_v30 = vld [vmem:[#allocation4 + $0x348] ss:$16 sps:$4 sm:$0xff]  }
 0x14f   :  { %1746 = vmatprep.subr.bf16.mxu0 %v2360_v32  ;;  %v2322_v32 = vld [vmem:[#allocation4 + $0x368] ss:$16 sps:$4 sm:$0xff]  }
 0x151   :  { %1261 = vmatpush1.bf16.msra.mxu1 %v2262_v31  ;;  %v2324_v31 = vld [vmem:[#allocation4 + $0x36c] ss:$16 sps:$4 sm:$0xff]  }
 0x152   :  { %1262 = vmatprep.subr.bf16.mxu1 %v2267_v33  ;;  %1747 = vmatpush1.bf16.msra.mxu0 %v2358_v34  ;;  %v2327_v33 = vld [vmem:[#allocation4 + $0x38c] ss:$16 sps:$4 sm:$0xff]   ;;  %v2325_v34 = vld [vmem:[#allocation4 + $0x388] ss:$16 sps:$4 sm:$0xff]  }
 0x153   :  { %1748 = vmatprep.subr.bf16.mxu0 %v2363_v36  ;;  %v2328_v36 = vld [vmem:[#allocation4 + $0x3a8] ss:$16 sps:$4 sm:$0xff]  }
 0x155   :  { %1263 = vmatpush1.bf16.msra.mxu1 %v2265_v35  ;;  %v2330_v35 = vld [vmem:[#allocation4 + $0x3ac] ss:$16 sps:$4 sm:$0xff]  }
 0x156   :  { %1264 = vmatprep.subr.bf16.mxu1 %v2270_v39  ;;  %1749 = vmatpush1.bf16.msra.mxu0 %v2361_v43  ;;  %v2333_v39 = vld [vmem:[#allocation4 + $0x3cc] ss:$16 sps:$4 sm:$0xff]   ;;  %v2331_v43 = vld [vmem:[#allocation4 + $0x3c8] ss:$16 sps:$4 sm:$0xff]  }
 0x157   :  { %1750 = vmatprep.subr.bf16.mxu0 %v2366_v45  ;;  %v2334_v45 = vld [vmem:[#allocation4 + $0x3e8] ss:$16 sps:$4 sm:$0xff]  }
 0x159   :  { %1265 = vmatpush1.bf16.msra.mxu1 %v2268_v44  ;;  %v2336_v44 = vld [vmem:[#allocation4 + $0x3ec] ss:$16 sps:$4 sm:$0xff]  }
 0x15a   :  { %1266 = vmatprep.subr.bf16.mxu1 %v2273_v46  ;;  %1751 = vmatpush1.bf16.msra.mxu0 %v2364_v47  ;;  %v2642_v46 = vld [vmem:[%s2678_s4] sm:$0xf] }
 0x15b   :  { %1752 = vmatprep.subr.bf16.mxu0 %v2369_v49  ;;  %v507_v47 = vrot.slane %v2642_v46, %v2611_v38 }
 0x15d   :  { %1267 = vmatpush1.bf16.msra.mxu1 %v2271_v48  ;;  %v511_v48 = vrot.slane %v2642_v46, %v2617_v40 }
 0x15e   :  { %1268 = vmatprep.subr.bf16.mxu1 %v2276_v50  ;;  %1753 = vmatpush1.bf16.msra.mxu0 %v2367_v51 }
 0x15f   :  { %1754 = vmatprep.subr.bf16.mxu0 %v2372_v53 }
 0x161   :  { %1269 = vmatpush1.bf16.msra.mxu1 %v2274_v52 }
 0x162   :  { %1270 = vmatprep.subr.bf16.mxu1 %v2279_v54  ;;  %1755 = vmatpush1.bf16.msra.mxu0 %v2370_v55 }
 0x163   :  { %1756 = vmatprep.subr.bf16.mxu0 %v2375_v57 }
 0x165   :  { %1271 = vmatpush1.bf16.msra.mxu1 %v2277_v56 }
 0x166   :  { %1272 = vmatprep.subr.bf16.mxu1 %v2282_v58  ;;  %1757 = vmatpush1.bf16.msra.mxu0 %v2373_v59 }
 0x167   :  { %1758 = vmatprep.subr.bf16.mxu0 %v2378_v61 }
 0x169   :  { %1273 = vmatpush1.bf16.msra.mxu1 %v2280_v60 }
 0x16a   :  { %1274 = vmatprep.subr.bf16.mxu1 %v2285_v62  ;;  %1759 = vmatpush1.bf16.msra.mxu0 %v2376_v63  ;;  %v2385_v63 = vld [vmem:[#allocation6 + $0x100] ss:$8 sps:$4 sm:$0xff]  }
 0x16b   :  { %1760 = vmatprep.subr.bf16.mxu0 %v2381_v18  ;;  %v2414_v18 = vld [vmem:[#allocation6 + $0x194] ss:$8 sps:$4 sm:$0xff]  }
 0x16d   :  { %1275 = vmatpush1.bf16.msra.mxu1 %v2283_v0 }
 0x16e   :  { %1276 = vmatprep.subr.bf16.mxu1 %v2288_v4  ;;  %1761 = vmatpush1.bf16.msra.mxu0 %v2379_v20  ;;  %v2390_v4 = vld [vmem:[#allocation6 + $0x114] ss:$8 sps:$4 sm:$0xff]   ;;  %v2417_v20 = vld [vmem:[#allocation6 + $0x1a4] ss:$8 sps:$4 sm:$0xff]  }
 0x16f   :  { %1762 = vmatprep.subr.bf16.mxu0 %v2384_v22  ;;  %v2420_v22 = vld [vmem:[#allocation6 + $0x1b4] ss:$8 sps:$4 sm:$0xff]  }
 0x171   :  { %1277 = vmatpush1.bf16.msra.mxu1 %v2286_v5  ;;  %v2388_v5 = vld [vmem:[#allocation6 + $0x110] ss:$8 sps:$4 sm:$0xff]  }
 0x172   :  { %1287 = vmatprep.subr.bf16.mxu1 %v2291_v6  ;;  %1763 = vmatpush1.bf16.msra.mxu0 %v2382_v24  ;;  %v2393_v6 = vld [vmem:[#allocation6 + $0x124] ss:$8 sps:$4 sm:$0xff]  }
 0x173   :  { %1773 = vmatprep.subr.bf16.mxu0 %v2387_v27  ;;  %v2423_v24 = vld [vmem:[#allocation6 + $0x1c4] ss:$8 sps:$4 sm:$0xff]   ;;  %v2424_v27 = vld [vmem:[#allocation6 + $0x1d0] ss:$8 sps:$4 sm:$0xff]  }
 0x174   :  { %1279 = vmatmul.mubr.bf16.vlgmr.msra.gmra.mrb[8].mxu1 %v2627_v1  ;;  %v2304_v1 = vld [vmem:[#allocation4 + $0x2a8] ss:$16 sps:$4 sm:$0xff]  }
 0x175   :  { %1288 = vmatpush1.bf16.msra.mxu1 %v2289_v7  ;;  %1319 = vmatprep.mubr.bf16.mxu1 %v2631_v3  ;;  %v2307_v3 = vld [vmem:[#allocation4 + $0x2c8] ss:$16 sps:$4 sm:$0xff]  }
 0x176   :  { %1289 = vmatprep.subr.bf16.mxu1 %v2294_v8  ;;  %v2391_v7 = vld [vmem:[#allocation6 + $0x120] ss:$8 sps:$4 sm:$0xff]   ;;  %v2396_v8 = vld [vmem:[#allocation6 + $0x134] ss:$8 sps:$4 sm:$0xff]  }
 0x179   :  { %1290 = vmatpush1.bf16.msra.mxu1 %v2292_v9  ;;  %v2394_v9 = vld [vmem:[#allocation6 + $0x130] ss:$8 sps:$4 sm:$0xff]  }
 0x17a   :  { %1291 = vmatprep.subr.bf16.mxu1 %v2297_v10  ;;  %v2399_v10 = vld [vmem:[#allocation6 + $0x144] ss:$8 sps:$4 sm:$0xff]  }
 0x17d   :  { %1292 = vmatpush1.bf16.msra.mxu1 %v2295_v11  ;;  %v2397_v11 = vld [vmem:[#allocation6 + $0x140] ss:$8 sps:$4 sm:$0xff]  }
 0x17e   :  { %1293 = vmatprep.subr.bf16.mxu1 %v2300_v12  ;;  %v2402_v12 = vld [vmem:[#allocation6 + $0x154] ss:$8 sps:$4 sm:$0xff]  }
 0x181   :  { %1294 = vmatpush1.bf16.msra.mxu1 %v2298_v13  ;;  %v2400_v13 = vld [vmem:[#allocation6 + $0x150] ss:$8 sps:$4 sm:$0xff]  }
 0x182   :  { %1295 = vmatprep.subr.bf16.mxu1 %v2303_v14  ;;  %v2405_v14 = vld [vmem:[#allocation6 + $0x164] ss:$8 sps:$4 sm:$0xff]  }
 0x185   :  { %1296 = vmatpush1.bf16.msra.mxu1 %v2301_v15  ;;  %v2403_v15 = vld [vmem:[#allocation6 + $0x160] ss:$8 sps:$4 sm:$0xff]  }
 0x186   :  { %1297 = vmatprep.subr.bf16.mxu1 %v2306_v16  ;;  %v2408_v16 = vld [vmem:[#allocation6 + $0x174] ss:$8 sps:$4 sm:$0xff]  }
 0x189   :  { %1298 = vmatpush1.bf16.msra.mxu1 %v2304_v1  ;;  %v2406_v1 = vld [vmem:[#allocation6 + $0x170] ss:$8 sps:$4 sm:$0xff]  }
 0x18a   :  { %1299 = vmatprep.subr.bf16.mxu1 %v2309_v17  ;;  %v2411_v17 = vld [vmem:[#allocation6 + $0x184] ss:$8 sps:$4 sm:$0xff]  }
 0x18d   :  { %1300 = vmatpush1.bf16.msra.mxu1 %v2307_v3  ;;  %v2409_v3 = vld [vmem:[#allocation6 + $0x180] ss:$8 sps:$4 sm:$0xff]  }
 0x18e   :  { %1301 = vmatprep.subr.bf16.mxu1 %v2312_v19  ;;  %v2412_v19 = vld [vmem:[#allocation6 + $0x190] ss:$8 sps:$4 sm:$0xff]  }
 0x191   :  { %1302 = vmatpush1.bf16.msra.mxu1 %v2310_v21  ;;  %v2415_v21 = vld [vmem:[#allocation6 + $0x1a0] ss:$8 sps:$4 sm:$0xff]  }
 0x192   :  { %1303 = vmatprep.subr.bf16.mxu1 %v2315_v23  ;;  %v2418_v23 = vld [vmem:[#allocation6 + $0x1b0] ss:$8 sps:$4 sm:$0xff]  }
 0x195   :  { %1304 = vmatpush1.bf16.msra.mxu1 %v2313_v25  ;;  %v2421_v25 = vld [vmem:[#allocation6 + $0x1c0] ss:$8 sps:$4 sm:$0xff]  }
 0x196   :  { %1305 = vmatprep.subr.bf16.mxu1 %v2318_v26  ;;  %v2426_v26 = vld [vmem:[#allocation6 + $0x1d4] ss:$8 sps:$4 sm:$0xff]  }
 0x199   :  { %1306 = vmatpush1.bf16.msra.mxu1 %v2316_v28  ;;  %v2429_v28 = vld [vmem:[#allocation6 + $0x1e4] ss:$8 sps:$4 sm:$0xff]  }
 0x19a   :  { %1307 = vmatprep.subr.bf16.mxu1 %v2321_v29  ;;  %v2427_v29 = vld [vmem:[#allocation6 + $0x1e0] ss:$8 sps:$4 sm:$0xff]  }
 0x19d   :  { %1308 = vmatpush1.bf16.msra.mxu1 %v2319_v30  ;;  %v2432_v30 = vld [vmem:[#allocation6 + $0x1f4] ss:$8 sps:$4 sm:$0xff]  }
 0x19e   :  { %1309 = vmatprep.subr.bf16.mxu1 %v2324_v31  ;;  %v2430_v31 = vld [vmem:[#allocation6 + $0x1f0] ss:$8 sps:$4 sm:$0xff]  }
 0x1a1   :  { %1310 = vmatpush1.bf16.msra.mxu1 %v2322_v32  ;;  %v515_v32 = vrot.slane %v2642_v46, %v114_v41  ;;  %v1400_v41 = vld [vmem:[%s2680_s6] sm:$0x3] }
 0x1a2   :  { %1311 = vmatprep.subr.bf16.mxu1 %v2327_v33  ;;  %v519_v33 = vrot.slane %v2642_v46, %v118_v42  ;;  %v1405_v37 = vrot.slane %v1400_v41, %v2611_v38  ;;  %v1409_v42 = vrot.slane %v1400_v41, %v2617_v40 }
 0x1a5   :  { %1312 = vmatpush1.bf16.msra.mxu1 %v2325_v34 }
 0x1a6   :  { %1313 = vmatprep.subr.bf16.mxu1 %v2330_v35 }
 0x1a9   :  { %1314 = vmatpush1.bf16.msra.mxu1 %v2328_v36 }
 0x1aa   :  { %1315 = vmatprep.subr.bf16.mxu1 %v2333_v39 }
 0x1ad   :  { %1316 = vmatpush1.bf16.msra.mxu1 %v2331_v43 }
 0x1ae   :  { %1317 = vmatprep.subr.bf16.mxu1 %v2336_v44 }
 0x1b1   :  { %1318 = vmatpush1.bf16.msra.mxu1 %v2334_v45 }
 0x1b4   :  { %1320 = vmatmul.mubr.bf16.vlgmr.msra.gmra.mrb[8].mxu1 %v2629_v2 }
 0x207   :  { %v1198_v49 = vpop.f32.mrb[4].mxu1  ;;  %v1239_v54 = vpop.f32.mrb[4].mxu0 }
 0x208   :  { %v1199_v50 = vadd.f32 %v1198_v49, %v507_v47  ;;  %v1200_v51 = vpop.f32.mrb[5].mxu1  ;;  %v1241_v2 = vpop.f32.mrb[5].mxu0 }
 0x209   :  { %v1201_v52 = vadd.f32 %v1200_v51, %v511_v48  ;;  %v1202_v53 = vpop.f32.mrb[6].mxu1  ;;  %v1243_v58 = vpop.f32.mrb[6].mxu0 }
 0x20a   :  { %v1240_v55 = vadd.f32 %v1239_v54, %v1199_v50  ;;  %v1203_v56 = vpop.f32.mrb[7].mxu1  ;;  %v1244_v60 = vpop.f32.mrb[7].mxu0 }
 0x20b   :  { %v1242_v57 = vadd.f32 %v1241_v2, %v1201_v52 }
 0x20c   :  { %v1328_v59 = vmax.f32 %v1240_v55, 0.0 }
 0x20d   :  { %v1329_v61 = vmax.f32 %v1242_v57, 0.0 }
 0x20e   :  { %v1332_v0 = vpack.c.bf16 %v1328_v59, %v1328_v59  ;;  %v2443_v59 = vld [vmem:[%s2674_s0] sm:$0xff] }
 0x20f   :  { %v1333_v62 = vpack.c.bf16 %v1329_v61, %v1329_v61 }
 0x211   :  { %1764 = vmatprep.mubr.bf16.mxu0 %v1333_v62 }
 0x212   :  { %1765 = vmatmul.mubr.bf16.vlgmr.msra.gmra.mrb[8].mxu0 %v1332_v0 }
 0x213   :  { %1774 = vmatpush1.bf16.msra.mxu0 %v2385_v63 }
 0x214   :  { %1775 = vmatprep.subr.bf16.mxu0 %v2390_v4 }
 0x217   :  { %1776 = vmatpush1.bf16.msra.mxu0 %v2388_v5  ;;  %v1823_v5 = vmul.f32 -0.5, %v2443_v59 }
 0x218   :  { %1777 = vmatprep.subr.bf16.mxu0 %v2393_v6 }
 0x219   :  { %v1824_v6 = vmul.f32 %v2443_v59, %v1823_v5 }
 0x21b   :  { %1778 = vmatpush1.bf16.msra.mxu0 %v2391_v7 }
 0x21c   :  { %1779 = vmatprep.subr.bf16.mxu0 %v2396_v8 }
 0x21f   :  { %1780 = vmatpush1.bf16.msra.mxu0 %v2394_v9 }
 0x220   :  { %1781 = vmatprep.subr.bf16.mxu0 %v2399_v10 }
 0x223   :  { %1782 = vmatpush1.bf16.msra.mxu0 %v2397_v11 }
 0x224   :  { %1783 = vmatprep.subr.bf16.mxu0 %v2402_v12 }
 0x227   :  { %1784 = vmatpush1.bf16.msra.mxu0 %v2400_v13 }
 0x228   :  { %1785 = vmatprep.subr.bf16.mxu0 %v2405_v14 }
 0x22b   :  { %1786 = vmatpush1.bf16.msra.mxu0 %v2403_v15 }
 0x22c   :  { %1787 = vmatprep.subr.bf16.mxu0 %v2408_v16 }
 0x22f   :  { %1788 = vmatpush1.bf16.msra.mxu0 %v2406_v1 }
 0x230   :  { %1789 = vmatprep.subr.bf16.mxu0 %v2411_v17 }
 0x233   :  { %1790 = vmatpush1.bf16.msra.mxu0 %v2409_v3 }
 0x234   :  { %1791 = vmatprep.subr.bf16.mxu0 %v2414_v18 }
 0x237   :  { %1792 = vmatpush1.bf16.msra.mxu0 %v2412_v19 }
 0x238   :  { %1793 = vmatprep.subr.bf16.mxu0 %v2417_v20 }
 0x23b   :  { %1794 = vmatpush1.bf16.msra.mxu0 %v2415_v21 }
 0x23c   :  { %1795 = vmatprep.subr.bf16.mxu0 %v2420_v22 }
 0x23f   :  { %1796 = vmatpush1.bf16.msra.mxu0 %v2418_v23 }
 0x240   :  { %1797 = vmatprep.subr.bf16.mxu0 %v2423_v24 }
 0x243   :  { %1798 = vmatpush1.bf16.msra.mxu0 %v2421_v25 }
 0x244   :  { %1799 = vmatprep.subr.bf16.mxu0 %v2426_v26 }
 0x247   :  { %1800 = vmatpush1.bf16.msra.mxu0 %v2424_v27 }
 0x248   :  { %1801 = vmatprep.subr.bf16.mxu0 %v2429_v28 }
 0x24b   :  { %1802 = vmatpush1.bf16.msra.mxu0 %v2427_v29 }
 0x24c   :  { %1803 = vmatprep.subr.bf16.mxu0 %v2432_v30 }
 0x24f   :  { %1804 = vmatpush1.bf16.msra.mxu0 %v2430_v31 }
 0x287   :  { %v1321_v34 = vpop.f32.mrb[8].mxu1 }
 0x288   :  { %v2077_v35 = vadd.f32 %v1321_v34, %v515_v32  ;;  %v1323_v36 = vpop.f32.mrb[9].mxu1 }
 0x289   :  { %v2078_v39 = vadd.f32 %v1323_v36, %v519_v33  ;;  %v1325_v43 = vpop.f32.mrb[10].mxu1 }
 0x28a   :  { %v1330_v44 = vmax.f32 %v2077_v35, 0.0  ;;  %v1326_v45 = vpop.f32.mrb[11].mxu1 }
 0x28b   :  { %v1331_v47 = vmax.f32 %v2078_v39, 0.0 }
 0x28c   :  { %v1334_v49 = vpack.c.bf16 %v1330_v44, %v1330_v44 }
 0x28d   :  { %v1335_v48 = vpack.c.bf16 %v1331_v47, %v1331_v47 }
 0x28f   :  { %1805 = vmatprep.mubr.bf16.mxu0 %v1335_v48 }
 0x290   :  { %1806 = vmatmul.mubr.bf16.vlgmr.msra.gmra.mrb[8].mxu0 %v1334_v49 }
 0x363   :  { %v1807_v46 = vpop.f32.mrb[8].mxu0 }
 0x364   :  { %v2079_v50 = vadd.f32 %v1807_v46, %v1405_v37  ;;  %v1809_v51 = vpop.f32.mrb[9].mxu0 }
 0x365   :  { %v2080_v52 = vadd.f32 %v1809_v51, %v1409_v42  ;;  %v1811_v53 = vpop.f32.mrb[10].mxu0 }
 0x366   :  { %2433 = vtanh.f32 %v2079_v50  ;;  %v1812_v54 = vpop.f32.mrb[11].mxu0 }
 0x367   :  { %2435 = vtanh.f32 %v2080_v52 }
 0x370   :  { %v2434_v55 = vpop.eup %2433 }
 0x371   :  { %v2436_v56 = vpop.eup %2435  ;;  %1839 = vst.msk [vmem:[%s2681_s7 + $0x8] sm:$0xff] %vm1833_vm0, %v2434_v55 }
 0x372   :  { %v1815_v2 = vadd.f32 1.0, %v2436_v56 }
 0x374   :  { %v1816_v38 = vmul.f32 11.0, %v1815_v2 }
 0x376   :  { %v1817_v57 = vadd.f32 -20.0, %v1816_v38 }
 0x378   :  { %v1818_v40 = vmul.f32 1.442695, %v1817_v57  ;;  %v1825_v7 = vsub.f32 %v1824_v6, %v1817_v57 }
 0x37a   :  { %2437 = vpow2.f32 %v1818_v40  ;;  %v2072_v9 = vadd.f32 -0.9189385, %v1825_v7 }
 0x384   :  { %v2438_v58 = vpop.eup %2437 }
 0x385   :  { %v1820_v60 = vmul.f32 %v2443_v59, %v2438_v58 }
 0x387   :  { %v1821_v61 = vadd.f32 %v2079_v50, %v1820_v60 }
 0x389   :  { %2439 = vtanh.f32 %v1821_v61 }
 0x393   :  { %v2440_v62 = vpop.eup %2439 }
 0x394   :  { %v1827_v63 = vmul.f32 %v2440_v62, %v2440_v62  ;;  %1837 = vst.msk [vmem:[%s2681_s7] sm:$0xff] %vm1833_vm0, %v2440_v62 }
 0x396   :  { %v1828_v0 = vsub.f32 1.0, %v1827_v63 }
 0x398   :  { %v1829_v4 = vadd.f32 1e-07, %v1828_v0 }
 0x39a   :  { %2441 = vlog2.f32 %v1829_v4 }
 0x3a4   :  { %v2442_v8 = vpop.eup %2441 }
 0x3a5   :  { %v1831_v10 = vmul.f32 0.6931472, %v2442_v8 }
 0x3a7   :  { %v1832_v11 = vsub.f32 %v2072_v9, %v1831_v10 }
 0x3a9   :  { %v1834_v12 = vsel %vm1833_vm0, %v1832_v11, 0.0 }
 0x3aa   :  { %1835 = vadd.xlane.f32.xlu0 %v1834_v12 }
 0x437   :  { %v1836_v13 = vpop.xlane.xlu0 %1835 }
 0x438   :  { %1841 = vst.msk [vmem:[%s2681_s7 + $0x10] sm:$0xff] %vm1840_vm1, %v1836_v13 }
 0x439   :  { %1846 = vsyncpa [#allocation3], 1 }
 0x43a   :  { %1847 = vsyncpa [#allocation5], 1 }

</bundles_post_ra>
